<compile_context>
chip_gen: v7x
topology: tpu7x:2x2x1
jax: 0.10.0
libtpu: 0.0.40
codegen_flags: <defaults>
</compile_context>

<pallas_src>
import jax
import jax.numpy as jnp
from jax.experimental import pallas as pl
from jax.experimental.pallas import tpu as pltpu

_LANE = 128
_WIDTH_CANDIDATES = (4096, 2048, 1024, 512, 256, 128)


def _sigmoidal_kernel(x_ref, o_ref):
    # (1 - exp(-x)) / (1 + exp(-x)) == tanh(x / 2): one EUP op, no overflow.
    o_ref[...] = jnp.tanh(x_ref[...] * 0.5)


def _tile_params_for_device():
    """Returns (target_tile_bytes, vmem_limit_bytes or None) per TPU generation."""
    tile, vmem_limit = 4 << 20, 32 << 20  # sensible default
    try:
        kind = jax.devices()[0].device_kind.lower()
    except Exception:  # detection is best-effort only
        return tile, vmem_limit
    if any(t in kind for t in ("v2", "v3", "v4", "v5")):
        # v5e & older: 2 MiB tiles already sit near HBM roofline and the
        # 4-buffer working set (8 MiB) fits the 16 MiB scoped-VMEM default.
        return 2 << 20, None
    if "v6" in kind:
        return 4 << 20, 32 << 20
    if "7" in kind:
        # v7x: ~3.2 TB/s per-TC HBM -> bigger tiles to amortize per-step
        # overhead; 4 x 8 MiB buffers exceed the 32 MiB scoped default, so
        # raise the limit explicitly (64 MiB physical VMEM per TC).
        return 8 << 20, 48 << 20
    return tile, vmem_limit


def _choose_width(total, sub):
    """Widest lane-dense last dim; prefer widths that keep rows a multiple of sub."""
    for cand in _WIDTH_CANDIDATES:
        if total % (cand * sub) == 0:
            return cand
    for cand in _WIDTH_CANDIDATES:
        if total % cand == 0:
            return cand
    return _LANE


def sigmoidal(x: jax.Array, *, donate: bool = False) -> jax.Array:
    """Elementwise 'sigmoidal' activation ((1-e^-x)/(1+e^-x)) via a Pallas TPU kernel.

    donate=True aliases the output onto the input HBM buffer
    (input_output_aliases={0: 0}) for in-place use when the caller donates x.
    """
    orig_shape = x.shape
    dtype = x.dtype
    n = x.size
    if n == 0:
        return x

    itemsize = x.dtype.itemsize
    # Sublane granule: 8 for 32-bit, 16 for 16-bit, 32 for 8-bit dtypes.
    sub = max(8, 32 // itemsize)

    x_flat = x.reshape(-1)
    n_pad = (-n) % _LANE
    if n_pad:
        # TODO(synk): handle a non-128-multiple tail with an in-kernel masked
        # store (scalar-prefetched true length) instead of this whole-array
        # pad + output slice; only sizes not a multiple of 128 hit this path.
        x_flat = jnp.pad(x_flat, (0, n_pad))
    total = x_flat.size

    width = _choose_width(total, sub)
    rows = total // width

    tile_bytes, vmem_limit = _tile_params_for_device()
    target_rows = max(sub, (tile_bytes // (width * itemsize)) // sub * sub)
    block_rows = min(rows, target_rows)
    # Guarantee >=2 grid steps for large arrays so dual-TensorCore chips
    # (v7x) can shard the "parallel" grid axis across both cores.
    if total * itemsize >= 2 * tile_bytes and rows >= 2 * sub:
        block_rows = min(block_rows, max(sub, (rows // 2) // sub * sub))

    grid = (pl.cdiv(rows, block_rows),)
    x2d = x_flat.reshape(rows, width)

    compiler_kwargs = dict(dimension_semantics=("parallel",))
    if vmem_limit is not None:
        compiler_kwargs["vmem_limit_bytes"] = vmem_limit
    call_kwargs = {"input_output_aliases": {0: 0}} if donate else {}

    out2d = pl.pallas_call(
        _sigmoidal_kernel,
        out_shape=jax.ShapeDtypeStruct((rows, width), dtype),
        grid_spec=pltpu.PrefetchScalarGridSpec(
            num_scalar_prefetch=0,
            grid=grid,
            in_specs=[pl.BlockSpec((block_rows, width), lambda i: (i, 0))],
            out_specs=pl.BlockSpec((block_rows, width), lambda i: (i, 0)),
        ),
        compiler_params=pltpu.CompilerParams(**compiler_kwargs),
        **call_kwargs,
    )(x2d)

    out_flat = out2d.reshape(-1)
    if n_pad:
        out_flat = out_flat[:n]
    return out_flat.reshape(orig_shape)


def _reference(x):
    z = jnp.exp(-x)
    return (1.0 - z) / (1.0 + z)


if __name__ == "__main__":
    key = jax.random.PRNGKey(0)

    # Small NCHW-shaped input consistent with typical conv-net activations.
    x = jax.random.normal(key, (2, 4, 16, 16), dtype=jnp.float32)
    y = sigmoidal(x)
    jax.block_until_ready(y)
    assert y.shape == x.shape and y.dtype == x.dtype
    assert jnp.allclose(y, _reference(x), atol=1e-5, rtol=1e-5)

    # Slightly larger, 128-aligned input exercises the wide lane-dense slab.
    x2 = jax.random.normal(jax.random.PRNGKey(1), (8, 16, 32, 32), dtype=jnp.float32)
    y2 = sigmoidal(x2)
    jax.block_until_ready(y2)
    assert y2.shape == x2.shape
    assert jnp.allclose(y2, _reference(x2), atol=1e-5, rtol=1e-5)

    # Ragged (non-128-multiple) size exercises the padded-tail fallback.
    x3 = jax.random.normal(jax.random.PRNGKey(2), (3, 5, 7), dtype=jnp.float32)
    y3 = sigmoidal(x3)
    jax.block_until_ready(y3)
    assert y3.shape == x3.shape
    assert jnp.allclose(y3, _reference(x3), atol=1e-5, rtol=1e-5)

    print("KERNEL_OK")
</pallas_src>

<mosaic_0001>
module attributes {stable_mosaic.version = 11 : i64} {
  func.func @_sigmoidal_kernel(%arg0: i32, %arg1: memref<8x256xf32, #tpu.memory_space<vmem>>, %arg2: memref<8x256xf32, #tpu.memory_space<vmem>>) attributes {dimension_semantics = [#tpu.dimension_semantics<parallel>], iteration_bounds = array<i64: 1>, scalar_prefetch = 0 : i64, scratch_operands = 0 : i64, tpu.core_type = #tpu.core_type<tc>, window_params = [{transform_indices = @transform_0, window_bounds = array<i64: 8, 256>}, {transform_indices = @transform_1, window_bounds = array<i64: 8, 256>}]} {
    %c0 = arith.constant 0 : index
    %c0_0 = arith.constant 0 : index
    %0 = vector.load %arg1[%c0, %c0_0] : memref<8x256xf32, #tpu.memory_space<vmem>>, vector<8x256xf32>
    %cst = arith.constant 5.000000e-01 : f32
    %1 = vector.broadcast %cst : f32 to vector<8x256xf32>
    %2 = arith.mulf %0, %1 : vector<8x256xf32>
    %3 = math.tanh %2 : vector<8x256xf32>
    %c0_1 = arith.constant 0 : index
    %c0_2 = arith.constant 0 : index
    %4 = vector.load %arg2[%c0_1, %c0_2] : memref<8x256xf32, #tpu.memory_space<vmem>>, vector<8x256xf32>
    tpu.vector_store %arg2[%c0_1, %c0_2], %3 {strides = array<i32>} : memref<8x256xf32, #tpu.memory_space<vmem>>, vector<8x256xf32>,
    return
  }
  func.func @transform_0(%arg0: i32) -> (i32, i32) {
    %c0_i32 = arith.constant 0 : i32
    %c0_i32_0 = arith.constant 0 : i32
    return %arg0, %c0_i32 : i32, i32
  }
  func.func @transform_1(%arg0: i32) -> (i32, i32) {
    %c0_i32 = arith.constant 0 : i32
    %c0_i32_0 = arith.constant 0 : i32
    return %arg0, %c0_i32 : i32, i32
  }
}

</mosaic_0001>

<bundles_post_ra>
// kernel: tpu_custom_call.1
= control target key start
LH: loop header
LB: loop body
LE: loop exit
PB: predicated region body
PF: predicated region fallthrough
CT: control target
= control target key end

     0   :  { %6 = vsyncpa [#allocation3], 0  ;;  %s134_s0 = inlined_call_operand.hbm [shape: f32[8,256], index: 0, kind: input, shape index: {}]   ;;  %s135_s1 = inlined_call_operand.hbm [shape: f32[8,256], index: 1, kind: output, shape index: {}]  }
   0x1   :  { %7 = vsyncpa [#allocation4], 0  ;;  %s98_s6 = smov [#allocation2]   ;;  %s50_s10 = scalar_lea.hbm %s134_s0, 256 }
   0x2   :  { %s14_s7 = sshll.u32 %s98_s6, 4  ;;  %p51_p0 = scmp.ne.s32.totalorder %s134_s0, %s50_s10  ;;  %s15_s7 = int_to_ptr.vmem [resolvable:$true] %s14_s7 }
   0x3   :  { %p54_p1 = scmp.lt.u32.totalorder %s50_s10, %s134_s0 }
   0x5   :  { %p56_p2 = pnand %p54_p1, %p51_p0 }
   0x7   :  { %59 = shalt.err (!%p56_p2)
}
   0x8   :  { %s60_s15 = scalar_lea.vmem %s15_s7, 256  ;;  %p65_p4 = scmp.lt.s32.totalorder %s15_s7, %s15_s7 }
   0x9   :  { %p61_p3 = scmp.ne.s32.totalorder %s15_s7, %s60_s15  ;;  %p66_p5 = scmp.lt.s32.totalorder %s60_s15, %s60_s15 }
   0xb   :  { %p67_p6 = por %p66_p5, %p65_p4 }
   0xd   :  { %p68_p7 = pnand %p67_p6, %p61_p3 }
   0xf   :  { %71 = shalt.err (!%p68_p7)
}
  0x10   :  { %17 = dma.hbm_to_vmem [thread:$0]  %s134_s0, 256, %s15_s7, [#allocation3]  }
  0x11   :  { %94 = dma.done.wait [#allocation3], 256  }
  0x12   :  { %95 = vsyncadd [#allocation3], 4294967040  ;;  %v21_v0 = vld [vmem:[#allocation2] sm:$0xff]  ;;  %v22_v1 = vld [vmem:[#allocation2 + $0x8] sm:$0xff]  ;;  %s99_s18 = smov [#allocation5]  }
  0x13   :  { %v23_v2 = vmul.f32 0.5, %v21_v0  ;;  %v24_v3 = vmul.f32 0.5, %v22_v1  ;;  %s35_s19 = sshll.u32 %s99_s18, 4  ;;  %s36_s19 = int_to_ptr.vmem [resolvable:$true] %s35_s19 }
  0x14   :  { %s72_s20 = scalar_lea.vmem %s36_s19, 256  ;;  %p77_p9 = scmp.lt.s32.totalorder %s36_s19, %s36_s19 }
  0x15   :  { %46 = vtanh.f32 %v23_v2  ;;  %p73_p8 = scmp.ne.s32.totalorder %s36_s19, %s72_s20  ;;  %p78_p10 = scmp.lt.s32.totalorder %s72_s20, %s72_s20 }
  0x16   :  { %48 = vtanh.f32 %v24_v3 }
  0x17   :  { %p79_p11 = por %p78_p10, %p77_p9 }
  0x19   :  { %p80_p12 = pnand %p79_p11, %p73_p8 }
  0x1f   :  { %v47_v4 = vpop.eup %46 }
  0x20   :  { %v49_v5 = vpop.eup %48  ;;  %27 = vst [vmem:[#allocation5] sm:$0xff] %v47_v4 }
  0x21   :  { %28 = vst [vmem:[#allocation5 + $0x8] sm:$0xff] %v49_v5 }
  0x22   :  { %83 = shalt.err (!%p80_p12)
}
  0x23   :  { %s84_s22 = scalar_lea.hbm %s135_s1, 256 }
  0x24   :  { %p85_p13 = scmp.ne.s32.totalorder %s135_s1, %s84_s22  ;;  %p88_p0 = scmp.lt.u32.totalorder %s84_s22, %s135_s1 }
  0x26   :  { %p90_p1 = pnand %p88_p0, %p85_p13 }
  0x28   :  { %93 = shalt.err (!%p90_p1)
}
  0x29   :  { %38 = dma.vmem_to_hbm [thread:$0]  %s36_s19, 256, %s135_s1, [#allocation4]  }
  0x2a   :  { %96 = dma.done.wait [#allocation4], 256  }
  0x2b   :  { %97 = vsyncadd [#allocation4], 4294967040 }
  0x2c   :  { %42 = vsyncpa [#allocation3], 1 }
  0x2d   :  { %43 = vsyncpa [#allocation4], 1 }

</bundles_post_ra>
